<compile_context>
chip_gen: v6e
topology: v6e:2x2x1
jax: 0.10.0
libtpu: 0.0.40
codegen_flags: <defaults>
</compile_context>

<pallas_src>
import functools

import jax
import jax.numpy as jnp
from jax import lax
from jax.experimental import pallas as pl
from jax.experimental.pallas import tpu as pltpu


def _attention_kernel(x_ref, w_ref, u_ref, r_ref, *, num_iterations):
    # x_ref: (B, S, D), w_ref: (D, H), u_ref: (1, H), r_ref: (B, D)
    B = x_ref.shape[0]
    w = w_ref[...]                                # native dtype -> MXU
    u = u_ref[...].astype(jnp.float32)            # (1, H)

    def _softmax_seq(s, *, exact):
        # Softmax over the sequence axis (PyTorch dim=1). s: (S, 1), f32.
        m = jnp.max(s, axis=0, keepdims=True)
        e = jnp.exp(s - m)
        denom = jnp.sum(e, axis=0, keepdims=True)
        # approx=True -> EUP vrcp (free slot); exact for the final softmax.
        return e * pl.reciprocal(denom, approx=not exact)

    rows = []
    for b in range(B):                            # B is tiny: static unroll,
        x_b = x_ref[b]                            # (S, D), native dtype
        # h = tanh(x W): one (S, D) @ (D, H) MXU matmul, f32 accumulate.
        h = jnp.tanh(jnp.dot(x_b, w, preferred_element_type=jnp.float32))
        # scores = h @ u^T  (MXU, trans_b) -> (S, 1)
        scores = lax.dot_general(
            h, u, (((1,), (1,)), ((), ())),
            preferred_element_type=jnp.float32)
        alpha = _softmax_seq(scores, exact=(num_iterations == 0))
        # r = alpha^T @ x  (MXU, trans_a) -> (1, D)
        r = lax.dot_general(
            alpha.astype(x_b.dtype), x_b, (((0,), (0,)), ((), ())),
            preferred_element_type=jnp.float32)

        for it in range(num_iterations):
            # s = x @ r^T  (MXU, trans_b) -> (S, 1)
            s = lax.dot_general(
                x_b, r.astype(x_b.dtype), (((1,), (1,)), ((), ())),
                preferred_element_type=jnp.float32)
            beta = _softmax_seq(s, exact=(it == num_iterations - 1))
            # r = beta^T @ x  (MXU, trans_a) -> (1, D)
            r = lax.dot_general(
                beta.astype(x_b.dtype), x_b, (((0,), (0,)), ((), ())),
                preferred_element_type=jnp.float32)
        rows.append(r)

    # Single store of the whole batch (D=32 < 128 lanes -> still a masked
    # partial store; acceptable at toy size).
    r_ref[...] = jnp.concatenate(rows, axis=0).astype(r_ref.dtype)


def attention_forward(x, W, u, num_iterations):
    """x: (B, S, D), W: (D, H), u: (H,) -> r: (B, 1, D)"""
    B, S, D = x.shape
    H = W.shape[1]
    u2d = u.reshape(1, H)

    kernel = functools.partial(_attention_kernel, num_iterations=num_iterations)

    x_bytes = x.size * jnp.dtype(x.dtype).itemsize
    w_bytes = W.size * jnp.dtype(W.dtype).itemsize
    u_bytes = u.size * jnp.dtype(u.dtype).itemsize
    out_bytes = B * D * jnp.dtype(x.dtype).itemsize

    flops = (2 * B * S * D * H                       # projection
             + 2 * B * S * H                         # scores
             + (1 + num_iterations) * (2 * B * S * D + 5 * B * S)   # softmax + wsum
             + num_iterations * 2 * B * S * D)       # x @ r^T
    transcendentals = B * S * H + (1 + num_iterations) * (B * S + B)

    r2d = pl.pallas_call(
        kernel,
        out_shape=jax.ShapeDtypeStruct((B, D), x.dtype),
        in_specs=[
            pl.BlockSpec(memory_space=pltpu.MemorySpace.VMEM),   # whole x
            pl.BlockSpec(memory_space=pltpu.MemorySpace.VMEM),   # W
            pl.BlockSpec(memory_space=pltpu.MemorySpace.VMEM),   # u
        ],
        out_specs=pl.BlockSpec(memory_space=pltpu.MemorySpace.VMEM),
        cost_estimate=pl.CostEstimate(
            flops=flops,
            transcendentals=transcendentals,
            bytes_accessed=x_bytes + w_bytes + u_bytes + out_bytes,
        ),
    )(x, W, u2d)
    return r2d.reshape(B, 1, D)


def attention_reference(x, W, u, num_iterations):
    """Pure-JAX reference mirroring the PyTorch forward exactly."""
    u_temp = jnp.tanh(jnp.einsum("bsd,dh->bsh", x, W))
    u_temp = jnp.einsum("bsh,h->bs", u_temp, u)
    alpha = jax.nn.softmax(u_temp, axis=1)[..., None]          # (B, S, 1)
    r = jnp.sum(alpha * x, axis=1, keepdims=True)              # (B, 1, D)
    for _ in range(num_iterations):
        s = jnp.einsum("bsd,bod->bs", x, r)                    # (B, S)
        beta = jax.nn.softmax(s, axis=1)[..., None]
        r = jnp.sum(beta * x, axis=1, keepdims=True)
    return r


def _orthogonal_init(key, rows, cols, dtype=jnp.float32):
    # Mimics torch.nn.init.orthogonal_: QR of a Gaussian, sign-corrected.
    n = max(rows, cols)
    a = jax.random.normal(key, (n, min(rows, cols)), dtype=dtype)
    q, r = jnp.linalg.qr(a)
    q = q * jnp.sign(jnp.diag(r))[None, :]
    if rows < cols:
        q = q.T
    return q[:rows, :cols]


if __name__ == "__main__":
    input_dim = 32      # D
    hidden_dim = 32     # H
    num_iterations = 2
    B, S = 2, 8

    key = jax.random.PRNGKey(0)
    kx, kw, ku = jax.random.split(key, 3)

    x = jax.random.normal(kx, (B, S, input_dim), dtype=jnp.float32)
    W = _orthogonal_init(kw, input_dim, hidden_dim)
    u = jax.random.normal(ku, (hidden_dim,), dtype=jnp.float32)

    r = attention_forward(x, W, u, num_iterations)
    r = jax.block_until_ready(r)

    r_ref = attention_reference(x, W, u, num_iterations)
    assert r.shape == (B, 1, input_dim), r.shape
    # approx=True reciprocal is used in the intermediate softmaxes only;
    # compare at 2e-3 to cover the compounded error through the iterations.
    assert jnp.allclose(r, r_ref, atol=2e-3, rtol=2e-3), (
        float(jnp.max(jnp.abs(r - r_ref))))

    print("KERNEL_OK")
</pallas_src>

<mosaic_0001>
module attributes {stable_mosaic.version = 11 : i64} {
  func.func @_attention_kernel(%arg0: memref<2x8x32xf32, #tpu.memory_space<vmem>>, %arg1: memref<32x32xf32, #tpu.memory_space<vmem>>, %arg2: memref<1x32xf32, #tpu.memory_space<vmem>>, %arg3: memref<2x32xf32, #tpu.memory_space<vmem>>) attributes {dimension_semantics = [], scalar_prefetch = 0 : i64, scratch_operands = 0 : i64, tpu.core_type = #tpu.core_type<tc>} {
    %c0 = arith.constant 0 : index
    %c0_0 = arith.constant 0 : index
    %0 = vector.load %arg1[%c0, %c0_0] : memref<32x32xf32, #tpu.memory_space<vmem>>, vector<32x32xf32>
    %c0_1 = arith.constant 0 : index
    %c0_2 = arith.constant 0 : index
    %1 = vector.load %arg2[%c0_1, %c0_2] : memref<1x32xf32, #tpu.memory_space<vmem>>, vector<1x32xf32>
    %c0_3 = arith.constant 0 : index
    %c0_4 = arith.constant 0 : index
    %c0_5 = arith.constant 0 : index
    %2 = vector.load %arg0[%c0_3, %c0_4, %c0_5] : memref<2x8x32xf32, #tpu.memory_space<vmem>>, vector<1x8x32xf32>
    %3 = vector.shape_cast %2 : vector<1x8x32xf32> to vector<8x32xf32>
    %cst = arith.constant dense<0.000000e+00> : vector<8x32xf32>
    %4 = tpu.matmul %3, %0, %cst {dimension_numbers = #tpu.dot_dimension_numbers<[1], [0], [0], [1], [0, 0, 1, 1], [], []>} : vector<8x32xf32>, vector<32x32xf32>, vector<8x32xf32> -> vector<8x32xf32>
    %5 = math.tanh %4 : vector<8x32xf32>
    %cst_6 = arith.constant dense<0.000000e+00> : vector<8x1xf32>
    %6 = tpu.matmul %5, %1, %cst_6 {dimension_numbers = #tpu.dot_dimension_numbers<[1], [1], [0], [0], [0, 0, 1, 0], [], []>} : vector<8x32xf32>, vector<1x32xf32>, vector<8x1xf32> -> vector<8x1xf32>
    %cst_7 = arith.constant dense<0xFF800000> : vector<1xf32>
    %7 = vector.multi_reduction <maximumf>, %6, %cst_7 [0] : vector<8x1xf32> to vector<1xf32>
    %8 = vector.shape_cast %7 : vector<1xf32> to vector<1x1xf32>
    %9 = vector.broadcast %8 : vector<1x1xf32> to vector<8x1xf32>
    %10 = arith.subf %6, %9 : vector<8x1xf32>
    %11 = math.exp %10 : vector<8x1xf32>
    %cst_8 = arith.constant dense<0.000000e+00> : vector<1xf32>
    %12 = vector.multi_reduction <add>, %11, %cst_8 [0] : vector<8x1xf32> to vector<1xf32>
    %13 = vector.shape_cast %12 : vector<1xf32> to vector<1x1xf32>
    %14 = tpu.reciprocal %13 {approx = true} : vector<1x1xf32> -> vector<1x1xf32>
    %15 = vector.broadcast %14 : vector<1x1xf32> to vector<8x1xf32>
    %16 = arith.mulf %11, %15 : vector<8x1xf32>
    %cst_9 = arith.constant dense<0.000000e+00> : vector<1x32xf32>
    %17 = tpu.matmul %16, %3, %cst_9 {dimension_numbers = #tpu.dot_dimension_numbers<[0], [0], [1], [1], [0, 1, 1, 1], [], []>} : vector<8x1xf32>, vector<8x32xf32>, vector<1x32xf32> -> vector<1x32xf32>
    %cst_10 = arith.constant dense<0.000000e+00> : vector<8x1xf32>
    %18 = tpu.matmul %3, %17, %cst_10 {dimension_numbers = #tpu.dot_dimension_numbers<[1], [1], [0], [0], [0, 0, 1, 0], [], []>} : vector<8x32xf32>, vector<1x32xf32>, vector<8x1xf32> -> vector<8x1xf32>
    %cst_11 = arith.constant dense<0xFF800000> : vector<1xf32>
    %19 = vector.multi_reduction <maximumf>, %18, %cst_11 [0] : vector<8x1xf32> to vector<1xf32>
    %20 = vector.shape_cast %19 : vector<1xf32> to vector<1x1xf32>
    %21 = vector.broadcast %20 : vector<1x1xf32> to vector<8x1xf32>
    %22 = arith.subf %18, %21 : vector<8x1xf32>
    %23 = math.exp %22 : vector<8x1xf32>
    %cst_12 = arith.constant dense<0.000000e+00> : vector<1xf32>
    %24 = vector.multi_reduction <add>, %23, %cst_12 [0] : vector<8x1xf32> to vector<1xf32>
    %25 = vector.shape_cast %24 : vector<1xf32> to vector<1x1xf32>
    %26 = tpu.reciprocal %25 {approx = true} : vector<1x1xf32> -> vector<1x1xf32>
    %27 = vector.broadcast %26 : vector<1x1xf32> to vector<8x1xf32>
    %28 = arith.mulf %23, %27 : vector<8x1xf32>
    %cst_13 = arith.constant dense<0.000000e+00> : vector<1x32xf32>
    %29 = tpu.matmul %28, %3, %cst_13 {dimension_numbers = #tpu.dot_dimension_numbers<[0], [0], [1], [1], [0, 1, 1, 1], [], []>} : vector<8x1xf32>, vector<8x32xf32>, vector<1x32xf32> -> vector<1x32xf32>
    %cst_14 = arith.constant dense<0.000000e+00> : vector<8x1xf32>
    %30 = tpu.matmul %3, %29, %cst_14 {dimension_numbers = #tpu.dot_dimension_numbers<[1], [1], [0], [0], [0, 0, 1, 0], [], []>} : vector<8x32xf32>, vector<1x32xf32>, vector<8x1xf32> -> vector<8x1xf32>
    %cst_15 = arith.constant dense<0xFF800000> : vector<1xf32>
    %31 = vector.multi_reduction <maximumf>, %30, %cst_15 [0] : vector<8x1xf32> to vector<1xf32>
    %32 = vector.shape_cast %31 : vector<1xf32> to vector<1x1xf32>
    %33 = vector.broadcast %32 : vector<1x1xf32> to vector<8x1xf32>
    %34 = arith.subf %30, %33 : vector<8x1xf32>
    %35 = math.exp %34 : vector<8x1xf32>
    %cst_16 = arith.constant dense<0.000000e+00> : vector<1xf32>
    %36 = vector.multi_reduction <add>, %35, %cst_16 [0] : vector<8x1xf32> to vector<1xf32>
    %37 = vector.shape_cast %36 : vector<1xf32> to vector<1x1xf32>
    %38 = tpu.reciprocal %37 : vector<1x1xf32> -> vector<1x1xf32>
    %39 = vector.broadcast %38 : vector<1x1xf32> to vector<8x1xf32>
    %40 = arith.mulf %35, %39 : vector<8x1xf32>
    %cst_17 = arith.constant dense<0.000000e+00> : vector<1x32xf32>
    %41 = tpu.matmul %40, %3, %cst_17 {dimension_numbers = #tpu.dot_dimension_numbers<[0], [0], [1], [1], [0, 1, 1, 1], [], []>} : vector<8x1xf32>, vector<8x32xf32>, vector<1x32xf32> -> vector<1x32xf32>
    %c1 = arith.constant 1 : index
    %c0_18 = arith.constant 0 : index
    %c0_19 = arith.constant 0 : index
    %42 = vector.load %arg0[%c1, %c0_18, %c0_19] : memref<2x8x32xf32, #tpu.memory_space<vmem>>, vector<1x8x32xf32>
    %43 = vector.shape_cast %42 : vector<1x8x32xf32> to vector<8x32xf32>
    %cst_20 = arith.constant dense<0.000000e+00> : vector<8x32xf32>
    %44 = tpu.matmul %43, %0, %cst_20 {dimension_numbers = #tpu.dot_dimension_numbers<[1], [0], [0], [1], [0, 0, 1, 1], [], []>} : vector<8x32xf32>, vector<32x32xf32>, vector<8x32xf32> -> vector<8x32xf32>
    %45 = math.tanh %44 : vector<8x32xf32>
    %cst_21 = arith.constant dense<0.000000e+00> : vector<8x1xf32>
    %46 = tpu.matmul %45, %1, %cst_21 {dimension_numbers = #tpu.dot_dimension_numbers<[1], [1], [0], [0], [0, 0, 1, 0], [], []>} : vector<8x32xf32>, vector<1x32xf32>, vector<8x1xf32> -> vector<8x1xf32>
    %cst_22 = arith.constant dense<0xFF800000> : vector<1xf32>
    %47 = vector.multi_reduction <maximumf>, %46, %cst_22 [0] : vector<8x1xf32> to vector<1xf32>
    %48 = vector.shape_cast %47 : vector<1xf32> to vector<1x1xf32>
    %49 = vector.broadcast %48 : vector<1x1xf32> to vector<8x1xf32>
    %50 = arith.subf %46, %49 : vector<8x1xf32>
    %51 = math.exp %50 : vector<8x1xf32>
    %cst_23 = arith.constant dense<0.000000e+00> : vector<1xf32>
    %52 = vector.multi_reduction <add>, %51, %cst_23 [0] : vector<8x1xf32> to vector<1xf32>
    %53 = vector.shape_cast %52 : vector<1xf32> to vector<1x1xf32>
    %54 = tpu.reciprocal %53 {approx = true} : vector<1x1xf32> -> vector<1x1xf32>
    %55 = vector.broadcast %54 : vector<1x1xf32> to vector<8x1xf32>
    %56 = arith.mulf %51, %55 : vector<8x1xf32>
    %cst_24 = arith.constant dense<0.000000e+00> : vector<1x32xf32>
    %57 = tpu.matmul %56, %43, %cst_24 {dimension_numbers = #tpu.dot_dimension_numbers<[0], [0], [1], [1], [0, 1, 1, 1], [], []>} : vector<8x1xf32>, vector<8x32xf32>, vector<1x32xf32> -> vector<1x32xf32>
    %cst_25 = arith.constant dense<0.000000e+00> : vector<8x1xf32>
    %58 = tpu.matmul %43, %57, %cst_25 {dimension_numbers = #tpu.dot_dimension_numbers<[1], [1], [0], [0], [0, 0, 1, 0], [], []>} : vector<8x32xf32>, vector<1x32xf32>, vector<8x1xf32> -> vector<8x1xf32>
    %cst_26 = arith.constant dense<0xFF800000> : vector<1xf32>
    %59 = vector.multi_reduction <maximumf>, %58, %cst_26 [0] : vector<8x1xf32> to vector<1xf32>
    %60 = vector.shape_cast %59 : vector<1xf32> to vector<1x1xf32>
    %61 = vector.broadcast %60 : vector<1x1xf32> to vector<8x1xf32>
    %62 = arith.subf %58, %61 : vector<8x1xf32>
    %63 = math.exp %62 : vector<8x1xf32>
    %cst_27 = arith.constant dense<0.000000e+00> : vector<1xf32>
    %64 = vector.multi_reduction <add>, %63, %cst_27 [0] : vector<8x1xf32> to vector<1xf32>
    %65 = vector.shape_cast %64 : vector<1xf32> to vector<1x1xf32>
    %66 = tpu.reciprocal %65 {approx = true} : vector<1x1xf32> -> vector<1x1xf32>
    %67 = vector.broadcast %66 : vector<1x1xf32> to vector<8x1xf32>
    %68 = arith.mulf %63, %67 : vector<8x1xf32>
    %cst_28 = arith.constant dense<0.000000e+00> : vector<1x32xf32>
    %69 = tpu.matmul %68, %43, %cst_28 {dimension_numbers = #tpu.dot_dimension_numbers<[0], [0], [1], [1], [0, 1, 1, 1], [], []>} : vector<8x1xf32>, vector<8x32xf32>, vector<1x32xf32> -> vector<1x32xf32>
    %cst_29 = arith.constant dense<0.000000e+00> : vector<8x1xf32>
    %70 = tpu.matmul %43, %69, %cst_29 {dimension_numbers = #tpu.dot_dimension_numbers<[1], [1], [0], [0], [0, 0, 1, 0], [], []>} : vector<8x32xf32>, vector<1x32xf32>, vector<8x1xf32> -> vector<8x1xf32>
    %cst_30 = arith.constant dense<0xFF800000> : vector<1xf32>
    %71 = vector.multi_reduction <maximumf>, %70, %cst_30 [0] : vector<8x1xf32> to vector<1xf32>
    %72 = vector.shape_cast %71 : vector<1xf32> to vector<1x1xf32>
    %73 = vector.broadcast %72 : vector<1x1xf32> to vector<8x1xf32>
    %74 = arith.subf %70, %73 : vector<8x1xf32>
    %75 = math.exp %74 : vector<8x1xf32>
    %cst_31 = arith.constant dense<0.000000e+00> : vector<1xf32>
    %76 = vector.multi_reduction <add>, %75, %cst_31 [0] : vector<8x1xf32> to vector<1xf32>
    %77 = vector.shape_cast %76 : vector<1xf32> to vector<1x1xf32>
    %78 = tpu.reciprocal %77 : vector<1x1xf32> -> vector<1x1xf32>
    %79 = vector.broadcast %78 : vector<1x1xf32> to vector<8x1xf32>
    %80 = arith.mulf %75, %79 : vector<8x1xf32>
    %cst_32 = arith.constant dense<0.000000e+00> : vector<1x32xf32>
    %81 = tpu.matmul %80, %43, %cst_32 {dimension_numbers = #tpu.dot_dimension_numbers<[0], [0], [1], [1], [0, 1, 1, 1], [], []>} : vector<8x1xf32>, vector<8x32xf32>, vector<1x32xf32> -> vector<1x32xf32>
    %82 = tpu.concatenate %41, %81 in 0 : vector<1x32xf32>, vector<1x32xf32> -> vector<2x32xf32>
    %c0_33 = arith.constant 0 : index
    %c0_34 = arith.constant 0 : index
    %83 = vector.load %arg3[%c0_33, %c0_34] : memref<2x32xf32, #tpu.memory_space<vmem>>, vector<2x32xf32>
    tpu.vector_store %arg3[%c0_33, %c0_34], %82 {strides = array<i32>} : memref<2x32xf32, #tpu.memory_space<vmem>>, vector<2x32xf32>,
    return
  }
}

</mosaic_0001>

<bundles_post_ra>
// kernel: tpu_custom_call.1
= control target key start
LH: loop header
LB: loop body
LE: loop exit
PB: predicated region body
PF: predicated region fallthrough
CT: control target
= control target key end

     0   :  { %8 = vsyncpa [#allocation3], 0  ;;  %s1298_s0 = inlined_call_operand.hbm [shape: f32[2,8,32], index: 0, kind: input, shape index: {}]   ;;  %s1299_s1 = inlined_call_operand.hbm [shape: f32[32,32], index: 1, kind: input, shape index: {}]   ;;  %s1300_s2 = inlined_call_operand.vmem [shape: f32[1,32], index: 2, kind: input, shape index: {}]   ;;  %s1301_s3 = inlined_call_operand.hbm [shape: f32[2,32], index: 3, kind: output, shape index: {}]  }
   0x1   :  { %9 = vsyncpa [#allocation6], 0 }
   0x2   :  { %10 = vsyncpa [#allocation4], 0  ;;  %s1186_s12 = smov [#allocation2]  }
   0x3   :  { %s16_s13 = sshll.u32 %s1186_s12, 4  ;;  %s17_s13 = int_to_ptr.vmem [resolvable:$true] %s16_s13 }
   0x4   :  { %s1128_s14 = scalar_lea.vmem %s17_s13, 256  ;;  %p1133_p1 = scmp.lt.s32.totalorder %s17_s13, %s17_s13 }
   0x5   :  { %p1129_p0 = scmp.ne.s32.totalorder %s17_s13, %s1128_s14  ;;  %p1134_p2 = scmp.lt.s32.totalorder %s1128_s14, %s1128_s14 }
   0x7   :  { %p1135_p3 = por %p1134_p2, %p1133_p1 }
   0x9   :  { %p1136_p4 = pnand %p1135_p3, %p1129_p0 }
   0xb   :  { %1139 = shalt.err (!%p1136_p4)
}
   0xc   :  { %s1187_s15 = smov 128   ;;  %s1188_s16 = smov 8  }
   0xd   :  { %22 = dma.hbm_to_vmem [thread:$0]  %s1298_s0, 256, %s17_s13, [#allocation3], %s1187_s15, %s1187_s15, %s1188_s16  }
   0xe   :  { %s1189_s19 = smov [#allocation5]  }
   0xf   :  { %s28_s20 = sshll.u32 %s1189_s19, 4  ;;  %s29_s20 = int_to_ptr.vmem [resolvable:$true] %s28_s20 }
  0x10   :  { %s1148_s21 = scalar_lea.vmem %s29_s20, 512  ;;  %p1153_p6 = scmp.lt.s32.totalorder %s29_s20, %s29_s20 }
  0x11   :  { %p1149_p5 = scmp.ne.s32.totalorder %s29_s20, %s1148_s21  ;;  %p1154_p7 = scmp.lt.s32.totalorder %s1148_s21, %s1148_s21 }
  0x13   :  { %p1155_p8 = por %p1154_p7, %p1153_p6 }
  0x15   :  { %p1156_p9 = pnand %p1155_p8, %p1149_p5 }
  0x17   :  { %1159 = shalt.err (!%p1156_p9)
}
  0x18   :  { %34 = dma.hbm_to_vmem [thread:$0]  %s1299_s1, 512, %s29_s20, [#allocation6], %s1187_s15, %s1187_s15, %s1188_s16  }
  0x19   :  { %1180 = dma.done.wait [#allocation3], 256  }
  0x1a   :  { %1181 = vsyncadd [#allocation3], 4294967040 }
  0x1b   :  { %1182 = dma.done.wait [#allocation6], 512  }
  0x1c   :  { %1183 = vsyncadd [#allocation6], 4294966784  ;;  %v1190_v0 = vmov 0.0   ;;  %vm1191_vm0 = vmmov 0   ;;  %v46_v1 = vld [vmem:[#allocation5 + $0x18] sm:$0xff]  ;;  %v45_v2 = vld [vmem:[#allocation5 + $0x10] sm:$0xff]  ;;  %v257_v31 = vlaneseq }
  0x1d   :  { %1033 = vmatprep.subr.mxu0 %v1190_v0  ;;  %1041 = vmatprep.mubr.msk.f32.mxu0 %vm1191_vm0, %v1190_v0  ;;  %v1225_v3 = vld [vmem:[#allocation2] sm:$0xff]  ;;  %v44_v4 = vld [vmem:[#allocation5 + $0x8] sm:$0xff]  ;;  %v43_v5 = vld [vmem:[#allocation5] sm:$0xff]  ;;  %vm49_vm1 = vcmask 261120   ;;  %vm183_vm2 = vcmask 64512   ;;  %vm982_vm3 = vcmask 1040384  }
  0x1e   :  { %1044 = vmatprep.subr.mxu1 %v1190_v0  ;;  %1046 = vmatprep.mubr.msk.f32.mxu1 %vm1191_vm0, %v1190_v0  ;;  %v1244_v8 = vld [vmem:[%s1300_s2] ss:$0 sm:$0xff]  ;;  %v258_v32 = vshrl.u32 %v257_v31, 7  ;;  %v1258_v39 = vld [vmem:[#allocation2 + $0x8] sm:$0xff]  ;;  %s1192_s2 = smov [#allocation7]   ;;  %vm984_vm4 = vcmask 254976  }
  0x1f   :  { %1034 = vmatpush3.msra.mxu0 %v46_v1  ;;  %1045 = vmatpush3.msra.mxu1 %v1225_v3  ;;  %s992_s24 = sshll.u32 %s1192_s2, 4  ;;  %s993_s24 = int_to_ptr.vmem [resolvable:$true] %s992_s24 }
  0x20   :  { %1035 = vmatprep.subr.mxu0 %v1190_v0  ;;  %1049 = vmatprep.subr.mxu1 %v1190_v0  ;;  %v1253_v33 = vsub.s32 0, %v258_v32  ;;  %s1160_s25 = scalar_lea.vmem %s993_s24, 32  ;;  %p1165_p11 = scmp.lt.s32.totalorder %s993_s24, %s993_s24 }
  0x21   :  { %1036 = vmatpush3.msra.mxu0 %v45_v2  ;;  %p1161_p10 = scmp.ne.s32.totalorder %s993_s24, %s1160_s25  ;;  %p1166_p12 = scmp.lt.s32.totalorder %s1160_s25, %s1160_s25 }
  0x22   :  { %1037 = vmatprep.subr.mxu0 %v1190_v0 }
  0x23   :  { %1038 = vmatpush3.msra.mxu0 %v44_v4  ;;  %p1167_p13 = por %p1166_p12, %p1165_p11 }
  0x24   :  { %1039 = vmatprep.subr.mxu0 %v1190_v0 }
  0x25   :  { %1040 = vmatpush3.msra.mxu0 %v43_v5  ;;  %p1168_p0 = pnand %p1167_p13, %p1161_p10 }
  0x26   :  { %1042 = vmatmul.mubr.msk.f32.vlgmr.msra.gmra.mxu0 %vm49_vm1, %v1225_v3  ;;  %1059 = vmatprep.subr.mxu0 %v1190_v0 }
  0x27   :  { %1060 = vmatpush3.msra.mxu0 %v46_v1  ;;  %1067 = vmatprep.mubr.msk.f32.mxu0 %vm1191_vm0, %v1190_v0 }
  0x28   :  { %1061 = vmatprep.subr.mxu0 %v1190_v0 }
  0x29   :  { %1062 = vmatpush3.msra.mxu0 %v45_v2 }
  0x2a   :  { %1063 = vmatprep.subr.mxu0 %v1190_v0 }
  0x2b   :  { %1064 = vmatpush3.msra.mxu0 %v44_v4 }
  0x2c   :  { %1065 = vmatprep.subr.mxu0 %v1190_v0 }
  0x2d   :  { %1066 = vmatpush3.msra.mxu0 %v43_v5 }
  0x2e   :  { %1080 = vmatprep.subr.mxu0 %v1190_v0  ;;  %1068 = vmatmul.mubr.msk.f32.vlgmr.msra.gmra.mxu0 %vm49_vm1, %v1258_v39 }
  0x2f   :  { %1081 = vmatpush3.msra.mxu0 %v1258_v39  ;;  %1082 = vmatprep.mubr.msk.f32.mxu0 %vm1191_vm0, %v1190_v0 }
  0xe6   :  { %v119_v6 = vpop.f32.mrf.mxu0 }
  0xe7   :  { %1092 = vtanh.f32 %v119_v6 }
  0xe8   :  { %v1043_v7 = vpop.f32.mrf.mxu0 }
  0xee   :  { %v588_v58 = vpop.f32.mrf.mxu0 }
  0xf0   :  { %v1069_v59 = vpop.f32.mrf.mxu0 }
  0xf4   :  { %v1093_v9 = vpop.eup %1092 }
  0xf5   :  { %v130_v10 = vmul.f32 %v1093_v9, %v1244_v8 }
  0xf7   :  { %v131_v11 = vsel %vm49_vm1, %v130_v10, 0.0 }
  0xf8   :  { %132 = vadd.xlane.f32.xlu0 %v131_v11 }
 0x181   :  { %v133_v12 = vpop.xlane.xlu0 %132 }
 0x182   :  { %v134_v13 = vrot.slane %v133_v12, 4 }
 0x184   :  { %v135_v14 = vmax.f32 %v133_v12, %v134_v13 }
 0x186   :  { %v136_v15 = vrot.slane %v135_v14, 2 }
 0x188   :  { %v137_v16 = vmax.f32 %v135_v14, %v136_v15 }
 0x18a   :  { %v138_v17 = vrot.slane %v137_v16, 1 }
 0x18c   :  { %v139_v18 = vmax.f32 %v137_v16, %v138_v17 }
 0x18e   :  { %v140_v19 = vsub.f32 %v133_v12, %v139_v18 }
 0x190   :  { %v141_v20 = vmul.f32 1.442695, %v140_v19 }
 0x192   :  { %1094 = vpow2.f32 %v141_v20 }
 0x19f   :  { %v1095_v21 = vpop.eup %1094 }
 0x1a0   :  { %v143_v22 = vrot.slane %v1095_v21, 4 }
 0x1a2   :  { %v144_v23 = vadd.f32 %v1095_v21, %v143_v22 }
 0x1a4   :  { %v145_v24 = vrot.slane %v144_v23, 2 }
 0x1a6   :  { %v146_v25 = vadd.f32 %v145_v24, %v144_v23 }
 0x1a8   :  { %v147_v26 = vrot.slane %v146_v25, 1 }
 0x1aa   :  { %v148_v27 = vadd.f32 %v147_v26, %v146_v25 }
 0x1ac   :  { %1096 = vrcp.f32 %v148_v27 }
 0x1b9   :  { %v1097_v28 = vpop.eup %1096 }
 0x1ba   :  { %v150_v29 = vmul.f32 %v1097_v28, %v1095_v21 }
 0x1bc   :  { %151 = vxpose.xlu0.b32.start.end [1/1] (short) (narrow) %v150_v29, 8 }
 0x238   :  { %v167_v30 = vpop.trf.xlu0 }
 0x239   :  { %1047 = vmatmul.mubr.msk.f32.vlgmr.msra.gmra.mxu1 %vm183_vm2, %v167_v30 }
 0x23a   :  { %1050 = vmatpush3.msra.mxu1 %v1225_v3  ;;  %1051 = vmatprep.mubr.msk.f32.mxu1 %vm1191_vm0, %v1190_v0 }
 0x23b   :  { %1054 = vmatprep.subr.mxu1 %v1190_v0 }
 0x2f9   :  { %v253_v34 = vpop.f32.mrf.mxu1 }
 0x2fa   :  { %v260_v35 = vrot.slane %v253_v34, %v1253_v33 }
 0x2fb   :  { %v1048_v36 = vpop.f32.mrf.mxu1 }
 0x2fc   :  { %v261_v37 = vmul.f32 %v260_v35, %v1225_v3 }
 0x2fe   :  { %v262_v38 = vsel %vm49_vm1, %v261_v37, 0.0 }
 0x2ff   :  { %263 = vadd.xlane.f32.xlu1 %v262_v38 }
 0x388   :  { %v264_v40 = vpop.xlane.xlu1 %263 }
 0x389   :  { %v265_v41 = vrot.slane %v264_v40, 4 }
 0x38b   :  { %v266_v42 = vmax.f32 %v264_v40, %v265_v41 }
 0x38d   :  { %v267_v43 = vrot.slane %v266_v42, 2 }
 0x38f   :  { %v268_v44 = vmax.f32 %v266_v42, %v267_v43 }
 0x391   :  { %v269_v45 = vrot.slane %v268_v44, 1 }
 0x393   :  { %v270_v46 = vmax.f32 %v268_v44, %v269_v45 }
 0x395   :  { %v271_v47 = vsub.f32 %v264_v40, %v270_v46 }
 0x397   :  { %v272_v48 = vmul.f32 1.442695, %v271_v47 }
 0x399   :  { %1098 = vpow2.f32 %v272_v48 }
 0x3a6   :  { %v1099_v49 = vpop.eup %1098 }
 0x3a7   :  { %v274_v50 = vrot.slane %v1099_v49, 4 }
 0x3a9   :  { %v275_v51 = vadd.f32 %v1099_v49, %v274_v50 }
 0x3ab   :  { %v276_v52 = vrot.slane %v275_v51, 2 }
 0x3ad   :  { %v277_v53 = vadd.f32 %v276_v52, %v275_v51 }
 0x3af   :  { %v278_v54 = vrot.slane %v277_v53, 1 }
 0x3b1   :  { %v279_v55 = vadd.f32 %v278_v54, %v277_v53 }
 0x3b3   :  { %1100 = vrcp.f32 %v279_v55 }
 0x3b4   :  { %1102 = vtanh.f32 %v588_v58 }
 0x3c0   :  { %v1101_v56 = vpop.eup %1100 }
 0x3c1   :  { %v281_v57 = vmul.f32 %v1101_v56, %v1099_v49  ;;  %v1103_v60 = vpop.eup %1102 }
 0x3c2   :  { %v593_v61 = vmul.f32 %v1103_v60, %v1244_v8 }
 0x3c3   :  { %282 = vxpose.xlu1.b32.start.end [1/1] (short) (narrow) %v281_v57, 8 }
 0x3c4   :  { %v594_v62 = vsel %vm49_vm1, %v593_v61, 0.0 }
 0x3ea   :  { %595 = vadd.xlane.f32.xlu1 %v594_v62 }
 0x43f   :  { %v298_v63 = vpop.trf.xlu1 }
 0x440   :  { %1052 = vmatmul.mubr.msk.f32.vlgmr.msra.gmra.mxu1 %vm183_vm2, %v298_v63 }
 0x441   :  { %1055 = vmatpush3.msra.mxu1 %v1225_v3  ;;  %1056 = vmatprep.mubr.msk.f32.mxu1 %vm1191_vm0, %v1190_v0 }
 0x442   :  { %1070 = vmatprep.subr.mxu1 %v1190_v0 }
 0x473   :  { %v596_v1 = vpop.xlane.xlu1 %595 }
 0x474   :  { %v597_v2 = vrot.slane %v596_v1, 4 }
 0x476   :  { %v598_v4 = vmax.f32 %v596_v1, %v597_v2 }
 0x478   :  { %v599_v5 = vrot.slane %v598_v4, 2 }
 0x47a   :  { %v600_v6 = vmax.f32 %v598_v4, %v599_v5 }
 0x47c   :  { %v601_v7 = vrot.slane %v600_v6, 1 }
 0x47e   :  { %v602_v8 = vmax.f32 %v600_v6, %v601_v7 }
 0x480   :  { %v603_v9 = vsub.f32 %v596_v1, %v602_v8 }
 0x482   :  { %v604_v10 = vmul.f32 1.442695, %v603_v9 }
 0x484   :  { %1104 = vpow2.f32 %v604_v10 }
 0x491   :  { %v1105_v16 = vpop.eup %1104 }
 0x492   :  { %v606_v17 = vrot.slane %v1105_v16, 4 }
 0x494   :  { %v607_v18 = vadd.f32 %v1105_v16, %v606_v17 }
 0x496   :  { %v608_v19 = vrot.slane %v607_v18, 2 }
 0x498   :  { %v609_v20 = vadd.f32 %v608_v19, %v607_v18 }
 0x49a   :  { %v610_v21 = vrot.slane %v609_v20, 1 }
 0x49c   :  { %v611_v22 = vadd.f32 %v610_v21, %v609_v20 }
 0x49e   :  { %1106 = vrcp.f32 %v611_v22 }
 0x4ab   :  { %v1107_v23 = vpop.eup %1106 }
 0x4ac   :  { %v613_v24 = vmul.f32 %v1107_v23, %v1105_v16 }
 0x4ae   :  { %614 = vxpose.xlu1.b32.start.end [1/1] (short) (narrow) %v613_v24, 8 }
 0x500   :  { %v383_v11 = vpop.f32.mrf.mxu1 }
 0x501   :  { %v390_v12 = vrot.slane %v383_v11, %v1253_v33 }
 0x502   :  { %v1053_v13 = vpop.f32.mrf.mxu1 }
 0x503   :  { %v391_v14 = vmul.f32 %v390_v12, %v1225_v3 }
 0x505   :  { %v392_v15 = vsel %vm49_vm1, %v391_v14, 0.0 }
 0x506   :  { %393 = vadd.xlane.f32.xlu0 %v392_v15 }
 0x52a   :  { %v630_v45 = vpop.trf.xlu1 }
 0x58f   :  { %v394_v25 = vpop.xlane.xlu0 %393 }
 0x590   :  { %v395_v26 = vrot.slane %v394_v25, 4 }
 0x592   :  { %v396_v27 = vmax.f32 %v394_v25, %v395_v26 }
 0x594   :  { %v397_v28 = vrot.slane %v396_v27, 2 }
 0x596   :  { %v398_v29 = vmax.f32 %v396_v27, %v397_v28 }
 0x598   :  { %v399_v3 = vrot.slane %v398_v29, 1 }
 0x59a   :  { %v400_v30 = vmax.f32 %v398_v29, %v399_v3 }
 0x59c   :  { %v401_v31 = vsub.f32 %v394_v25, %v400_v30 }
 0x59e   :  { %v402_v32 = vmul.f32 1.442695, %v401_v31 }
 0x5a0   :  { %1108 = vpow2.f32 %v402_v32 }
 0x5ad   :  { %v1109_v34 = vpop.eup %1108 }
 0x5ae   :  { %v404_v35 = vrot.slane %v1109_v34, 4 }
 0x5b0   :  { %v405_v36 = vadd.f32 %v1109_v34, %v404_v35 }
 0x5b2   :  { %v406_v37 = vrot.slane %v405_v36, 2 }
 0x5b4   :  { %v407_v38 = vadd.f32 %v406_v37, %v405_v36 }
 0x5b6   :  { %v408_v40 = vrot.slane %v407_v38, 1 }
 0x5b8   :  { %v409_v41 = vadd.f32 %v408_v40, %v407_v38 }
 0x5ba   :  { %1110 = vrcp.f32 %v409_v41 }
 0x5c7   :  { %v1111_v42 = vpop.eup %1110 }
 0x5c8   :  { %v411_v43 = vmul.f32 %v1111_v42, %v1109_v34 }
 0x5ca   :  { %412 = vxpose.xlu0.b32.start.end [1/1] (short) (narrow) %v411_v43, 8 }
 0x646   :  { %v428_v44 = vpop.trf.xlu0 }
 0x647   :  { %1057 = vmatmul.mubr.msk.f32.vlgmr.msra.gmra.mxu1 %vm183_vm2, %v428_v44 }
 0x648   :  { %1071 = vmatpush3.msra.mxu1 %v1258_v39  ;;  %1072 = vmatprep.mubr.msk.f32.mxu1 %vm1191_vm0, %v1190_v0 }
 0x649   :  { %1075 = vmatprep.subr.mxu1 %v1190_v0 }
 0x64b   :  { %1073 = vmatmul.mubr.msk.f32.vlgmr.msra.gmra.mxu1 %vm183_vm2, %v630_v45 }
 0x64c   :  { %1076 = vmatpush3.msra.mxu1 %v1258_v39  ;;  %1077 = vmatprep.mubr.msk.f32.mxu1 %vm1191_vm0, %v1190_v0 }
 0x707   :  { %v1284_v46 = vpop.f32.mrf.mxu1 }
 0x709   :  { %v1058_v47 = vpop.f32.mrf.mxu1 }
 0x70b   :  { %v715_v48 = vpop.f32.mrf.mxu1 }
 0x70c   :  { %v722_v49 = vrot.slane %v715_v48, %v1253_v33 }
 0x70d   :  { %v1074_v50 = vpop.f32.mrf.mxu1 }
 0x70e   :  { %v723_v51 = vmul.f32 %v722_v49, %v1258_v39 }
 0x710   :  { %v724_v52 = vsel %vm49_vm1, %v723_v51, 0.0 }
 0x711   :  { %725 = vadd.xlane.f32.xlu0 %v724_v52 }
 0x79a   :  { %v726_v53 = vpop.xlane.xlu0 %725 }
 0x79b   :  { %v727_v54 = vrot.slane %v726_v53, 4 }
 0x79d   :  { %v728_v55 = vmax.f32 %v726_v53, %v727_v54 }
 0x79f   :  { %v729_v56 = vrot.slane %v728_v55, 2 }
 0x7a1   :  { %v730_v57 = vmax.f32 %v728_v55, %v729_v56 }
 0x7a3   :  { %v731_v58 = vrot.slane %v730_v57, 1 }
 0x7a5   :  { %v732_v59 = vmax.f32 %v730_v57, %v731_v58 }
 0x7a7   :  { %v733_v0 = vsub.f32 %v726_v53, %v732_v59 }
 0x7a9   :  { %v734_v60 = vmul.f32 1.442695, %v733_v0 }
 0x7ab   :  { %1112 = vpow2.f32 %v734_v60 }
 0x7b8   :  { %v1113_v61 = vpop.eup %1112 }
 0x7b9   :  { %v736_v62 = vrot.slane %v1113_v61, 4 }
 0x7bb   :  { %v737_v63 = vadd.f32 %v1113_v61, %v736_v62 }
 0x7bd   :  { %v738_v1 = vrot.slane %v737_v63, 2 }
 0x7bf   :  { %v739_v2 = vadd.f32 %v738_v1, %v737_v63 }
 0x7c1   :  { %v740_v4 = vrot.slane %v739_v2, 1 }
 0x7c3   :  { %v741_v5 = vadd.f32 %v740_v4, %v739_v2 }
 0x7c5   :  { %1114 = vrcp.f32 %v741_v5 }
 0x7d2   :  { %v1115_v6 = vpop.eup %1114 }
 0x7d3   :  { %v743_v7 = vmul.f32 %v1115_v6, %v1113_v61 }
 0x7d5   :  { %744 = vxpose.xlu1.b32.start.end [1/1] (short) (narrow) %v743_v7, 8 }
 0x851   :  { %v760_v8 = vpop.trf.xlu1 }
 0x852   :  { %1078 = vmatmul.mubr.msk.f32.vlgmr.msra.gmra.mxu1 %vm183_vm2, %v760_v8 }
 0x912   :  { %v845_v9 = vpop.f32.mrf.mxu1 }
 0x913   :  { %v852_v10 = vrot.slane %v845_v9, %v1253_v33 }
 0x914   :  { %v1079_v11 = vpop.f32.mrf.mxu1 }
 0x915   :  { %v853_v12 = vmul.f32 %v852_v10, %v1258_v39 }
 0x917   :  { %v854_v13 = vsel %vm49_vm1, %v853_v12, 0.0 }
 0x918   :  { %855 = vadd.xlane.f32.xlu1 %v854_v13 }
 0x9a1   :  { %v856_v14 = vpop.xlane.xlu1 %855 }
 0x9a2   :  { %v857_v15 = vrot.slane %v856_v14, 4 }
 0x9a4   :  { %v858_v16 = vmax.f32 %v856_v14, %v857_v15 }
 0x9a6   :  { %v859_v17 = vrot.slane %v858_v16, 2 }
 0x9a8   :  { %v860_v18 = vmax.f32 %v858_v16, %v859_v17 }
 0x9aa   :  { %v861_v19 = vrot.slane %v860_v18, 1 }
 0x9ac   :  { %v862_v20 = vmax.f32 %v860_v18, %v861_v19 }
 0x9ae   :  { %v863_v21 = vsub.f32 %v856_v14, %v862_v20 }
 0x9b0   :  { %v864_v22 = vmul.f32 1.442695, %v863_v21 }
 0x9b2   :  { %1116 = vpow2.f32 %v864_v22 }
 0x9bf   :  { %v1117_v23 = vpop.eup %1116 }
 0x9c0   :  { %v866_v24 = vrot.slane %v1117_v23, 4 }
 0x9c2   :  { %v867_v25 = vadd.f32 %v1117_v23, %v866_v24 }
 0x9c4   :  { %v868_v33 = vrot.slane %v867_v25, 2 }
 0x9c6   :  { %v869_v26 = vadd.f32 %v868_v33, %v867_v25 }
 0x9c8   :  { %v870_v27 = vrot.slane %v869_v26, 1 }
 0x9ca   :  { %v871_v39 = vadd.f32 %v870_v27, %v869_v26 }
 0x9cc   :  { %1118 = vrcp.f32 %v871_v39 }
 0x9d9   :  { %v1119_v28 = vpop.eup %1118 }
 0x9da   :  { %v873_v29 = vmul.f32 %v1119_v28, %v1117_v23 }
 0x9dc   :  { %874 = vxpose.xlu0.b32.start.end [1/1] (short) (narrow) %v873_v29, 8 }
 0xa58   :  { %v890_v3 = vpop.trf.xlu0 }
 0xa59   :  { %1083 = vmatmul.mubr.msk.f32.vlgmr.msra.gmra.mxu0 %vm183_vm2, %v890_v3 }
 0xb19   :  { %v975_v30 = vpop.f32.mrf.mxu0 }
 0xb1a   :  { %v980_v31 = vrot.slane %v975_v30, 7 }
 0xb1b   :  { %v1084_v32 = vpop.f32.mrf.mxu0 }
 0xb1c   :  { %v983_v34 = vsel %vm982_vm3, %v1284_v46, %v980_v31 }
 0xb1d   :  { %985 = vst.msk [vmem:[#allocation7] sm:$0x3] %vm984_vm4, %v983_v34 }
 0xb1e   :  { %1171 = shalt.err (!%p1168_p0)
}
 0xb1f   :  { %995 = dma.vmem_to_hbm [thread:$0]  %s993_s24, 32, %s1301_s3, [#allocation4]  }
 0xb20   :  { %1184 = dma.done.wait [#allocation4], 32  }
 0xb21   :  { %1185 = vsyncadd [#allocation4], 4294967264 }
 0xb22   :  { %999 = vsyncpa [#allocation3], 1 }
 0xb23   :  { %1000 = vsyncpa [#allocation6], 1 }
 0xb24   :  { %1001 = vsyncpa [#allocation4], 1 }

</bundles_post_ra>
